<compile_context>
chip_gen: v7x
topology: tpu7x:2x2x1
jax: 0.10.0
libtpu: 0.0.40
codegen_flags: <defaults>
</compile_context>

<pallas_src>
import functools

import jax
import jax.numpy as jnp
from jax.experimental import pallas as pl
from jax.experimental.pallas import tpu as pltpu

# ------------------------------- config -------------------------------------
LATENT_DIM = 32          # == timesformer "hidden_size" in this synthetic setup
CLIP_HIDDEN = 64         # CLIP text-encoder hidden width (synthetic)
CLIP_DIM = 512           # CLIP text feature dim (real CLIP ViT-B/32 text dim)
FRAME_SIZE = 16
OUT_DIM = FRAME_SIZE * FRAME_SIZE * 3   # 768 (multiple of 128 -> lane-dense)
VOCAB = 128              # matches the 128-lane width
SEQ = 8
M_PAD = 8                # pad batch to a full sublane tile


# ------------------------------ fused kernel ---------------------------------
def _fused_kernel(z_ref, oh_ref, wz_ref, wt_ref, b_ref, o_ref):
    """out = z @ W_fc_z + pooled_onehot @ W_text + bias  (all f32 accumulation).

    z_ref:  (M_PAD, LATENT_DIM)  bf16   (latent half of gen.fc input)
    oh_ref: (M_PAD, VOCAB)       bf16   (pooled one-hot token counts / SEQ)
    wz_ref: (LATENT_DIM, OUT_DIM) bf16  (latent half of gen.fc weight)
    wt_ref: (VOCAB, OUT_DIM)     bf16   (pre-composed tok_emb @ w_proj @ w_fc_t)
    b_ref:  (1, OUT_DIM)         f32
    o_ref:  (M_PAD, OUT_DIM)     f32
    """
    out = jnp.dot(z_ref[...], wz_ref[...], preferred_element_type=jnp.float32)
    out = out + jnp.dot(oh_ref[...], wt_ref[...],
                        preferred_element_type=jnp.float32)
    o_ref[...] = out + b_ref[...]          # unmasked (8, 768) lane-dense store


def fused_forward(z, pooled_onehot, w_fc_z_bf16, w_text_bf16, bias_f32):
    """One gridless pallas_call: fused concat + gen.fc with pre-composed text path."""
    B = z.shape[0]
    # Pad the M (batch) dimension to a full 8-sublane tile; zeros contribute
    # nothing and are sliced off outside the kernel.
    z_p = jnp.zeros((M_PAD, z.shape[1]), jnp.bfloat16).at[:B].set(
        z.astype(jnp.bfloat16))
    oh_p = jnp.zeros((M_PAD, VOCAB), jnp.bfloat16).at[:B].set(
        pooled_onehot.astype(jnp.bfloat16))

    vmem = pl.BlockSpec(memory_space=pltpu.MemorySpace.VMEM)
    out = pl.pallas_call(
        _fused_kernel,
        out_shape=jax.ShapeDtypeStruct((M_PAD, OUT_DIM), jnp.float32),
        in_specs=[vmem, vmem, vmem, vmem, vmem],
        out_specs=vmem,
    )(z_p, oh_p, w_fc_z_bf16, w_text_bf16, bias_f32)
    return out[:B]


# ----------------------------- the "module" ----------------------------------
class VideoGANWithTextConditioning:
    """JAX/Pallas reimplementation with deterministic synthetic parameters."""

    def __init__(self, latent_dim=LATENT_DIM, frame_size=FRAME_SIZE, seed=0):
        self.latent_dim = latent_dim
        self.frame_size = frame_size
        k = jax.random.PRNGKey(seed)
        k_emb, k_proj, k_w, k_b = jax.random.split(k, 4)
        # CLIP text path (synthetic): token embedding + projection to 512.
        self.tok_emb = jax.random.normal(k_emb, (VOCAB, CLIP_HIDDEN),
                                         jnp.float32) * 0.02
        self.w_proj = jax.random.normal(k_proj, (CLIP_HIDDEN, CLIP_DIM),
                                        jnp.float32) * (CLIP_HIDDEN ** -0.5)
        # gen.fc = Linear(hidden_size + 512, frame_size*frame_size*3).
        fan_in = latent_dim + CLIP_DIM
        w_fc = jax.random.normal(k_w, (fan_in, OUT_DIM),
                                 jnp.float32) * (fan_in ** -0.5)
        self.w_fc_z = w_fc[:latent_dim]          # (latent_dim, OUT_DIM)
        self.w_fc_t = w_fc[latent_dim:]          # (CLIP_DIM,  OUT_DIM)
        self.b_fc = (jax.random.normal(k_b, (1, OUT_DIM), jnp.float32)
                     * (fan_in ** -0.5))

        # ---- offline pre-composition of the (purely linear) text path ----
        # W_text = tok_emb @ w_proj @ w_fc_t : (VOCAB, OUT_DIM) ~ 192 KiB bf16.
        w_text = self.tok_emb @ self.w_proj @ self.w_fc_t
        self.w_text_bf16 = w_text.astype(jnp.bfloat16)
        self.w_fc_z_bf16 = self.w_fc_z.astype(jnp.bfloat16)

    @functools.partial(jax.jit, static_argnums=0)
    def forward(self, z, token_ids):
        # Gather + mean-pool expressed as a pooled one-hot count matrix (exact
        # in bf16: entries are k/SEQ with SEQ=8).  Out-of-range ids map to the
        # all-zero row instead of reading out of bounds.
        pooled_onehot = jax.nn.one_hot(token_ids, VOCAB,
                                       dtype=jnp.float32).sum(axis=1) / SEQ
        flat = fused_forward(z, pooled_onehot, self.w_fc_z_bf16,
                             self.w_text_bf16, self.b_fc)        # (B, 768)
        # layout: reshape to NCHW video frame (B, 3, frame_size, frame_size).
        video = flat.reshape(z.shape[0], 3, self.frame_size, self.frame_size)
        return video

    def __call__(self, z, token_ids):
        return self.forward(z, token_ids)


# --------------------------------- demo --------------------------------------
if __name__ == "__main__":
    key = jax.random.PRNGKey(0)
    k_z, k_tok = jax.random.split(key)
    B = 2
    z = jax.random.normal(k_z, (B, LATENT_DIM), jnp.float32)
    token_ids = jax.random.randint(k_tok, (B, SEQ), 0, VOCAB, jnp.int32)

    model = VideoGANWithTextConditioning(LATENT_DIM, FRAME_SIZE, seed=0)
    video = model(z, token_ids)
    jax.block_until_ready(video)

    # Reference check in plain JAX (original un-fused f32 math).
    emb = jnp.take(model.tok_emb, token_ids, axis=0).mean(axis=1)
    temb_ref = emb @ model.w_proj
    flat_ref = z @ model.w_fc_z + temb_ref @ model.w_fc_t + model.b_fc
    video_ref = flat_ref.reshape(B, 3, FRAME_SIZE, FRAME_SIZE)

    assert video.shape == (B, 3, FRAME_SIZE, FRAME_SIZE)
    # bf16 weights + pre-composed text path -> relaxed tolerance.
    assert jnp.allclose(video, video_ref, atol=2e-2, rtol=2e-2), (
        float(jnp.max(jnp.abs(video - video_ref))))

    print("KERNEL_OK")
</pallas_src>

<mosaic_0001>
module attributes {stable_mosaic.version = 11 : i64} {
  func.func @_fused_kernel(%arg0: memref<8x32xbf16, #tpu.memory_space<vmem>>, %arg1: memref<8x128xbf16, #tpu.memory_space<vmem>>, %arg2: memref<32x768xbf16, #tpu.memory_space<vmem>>, %arg3: memref<128x768xbf16, #tpu.memory_space<vmem>>, %arg4: memref<1x768xf32, #tpu.memory_space<vmem>>, %arg5: memref<8x768xf32, #tpu.memory_space<vmem>>) attributes {dimension_semantics = [], scalar_prefetch = 0 : i64, scratch_operands = 0 : i64, tpu.core_type = #tpu.core_type<tc>} {
    %c0 = arith.constant 0 : index
    %c0_0 = arith.constant 0 : index
    %0 = vector.load %arg0[%c0, %c0_0] : memref<8x32xbf16, #tpu.memory_space<vmem>>, vector<8x32xbf16>
    %c0_1 = arith.constant 0 : index
    %c0_2 = arith.constant 0 : index
    %1 = vector.load %arg2[%c0_1, %c0_2] : memref<32x768xbf16, #tpu.memory_space<vmem>>, vector<32x768xbf16>
    %cst = arith.constant dense<0.000000e+00> : vector<8x768xf32>
    %2 = tpu.matmul %0, %1, %cst {dimension_numbers = #tpu.dot_dimension_numbers<[1], [0], [0], [1], [0, 0, 1, 1], [], []>} : vector<8x32xbf16>, vector<32x768xbf16>, vector<8x768xf32> -> vector<8x768xf32>
    %c0_3 = arith.constant 0 : index
    %c0_4 = arith.constant 0 : index
    %3 = vector.load %arg1[%c0_3, %c0_4] : memref<8x128xbf16, #tpu.memory_space<vmem>>, vector<8x128xbf16>
    %c0_5 = arith.constant 0 : index
    %c0_6 = arith.constant 0 : index
    %4 = vector.load %arg3[%c0_5, %c0_6] : memref<128x768xbf16, #tpu.memory_space<vmem>>, vector<128x768xbf16>
    %cst_7 = arith.constant dense<0.000000e+00> : vector<8x768xf32>
    %5 = tpu.matmul %3, %4, %cst_7 {dimension_numbers = #tpu.dot_dimension_numbers<[1], [0], [0], [1], [0, 0, 1, 1], [], []>} : vector<8x128xbf16>, vector<128x768xbf16>, vector<8x768xf32> -> vector<8x768xf32>
    %6 = arith.addf %2, %5 : vector<8x768xf32>
    %c0_8 = arith.constant 0 : index
    %c0_9 = arith.constant 0 : index
    %7 = vector.load %arg4[%c0_8, %c0_9] : memref<1x768xf32, #tpu.memory_space<vmem>>, vector<1x768xf32>
    %8 = vector.broadcast %7 : vector<1x768xf32> to vector<8x768xf32>
    %9 = arith.addf %6, %8 : vector<8x768xf32>
    %c0_10 = arith.constant 0 : index
    %c0_11 = arith.constant 0 : index
    %10 = vector.load %arg5[%c0_10, %c0_11] : memref<8x768xf32, #tpu.memory_space<vmem>>, vector<8x768xf32>
    tpu.vector_store %arg5[%c0_10, %c0_11], %9 {strides = array<i32>} : memref<8x768xf32, #tpu.memory_space<vmem>>, vector<8x768xf32>,
    return
  }
}

</mosaic_0001>

<bundles_post_ra>
// kernel: forward.1
= control target key start
LH: loop header
LB: loop body
LE: loop exit
PB: predicated region body
PF: predicated region fallthrough
CT: control target
= control target key end

     0   :  { %v835_v1 = vmov 0   ;;  %vm506_vm0 = vcmask 261120   ;;  %v635_v63 = vlaneseq  ;;  %s1087_s3 = inlined_call_operand.vmem [shape: bf16[128,768], index: 3, kind: input, shape index: {}]   ;;  %s1088_s2 = inlined_call_operand.vmem [shape: bf16[32,768], index: 2, kind: input, shape index: {}]   ;;  %s1089_s1 = inlined_call_operand.vmem [shape: bf16[8,128], index: 1, kind: input, shape index: {}]   ;;  %s1090_s0 = inlined_call_operand.vmem [shape: bf16[8,32], index: 0, kind: input, shape index: {}]   ;;  %s1091_s4 = inlined_call_operand.vmem [shape: f32[1,768], index: 4, kind: input, shape index: {}]   ;;  %s1092_s5 = inlined_call_operand.vmem [shape: f32[8,768], index: 5, kind: output, shape index: {}]  }
   0x1   :  { %v745_v0 = vld [vmem:[%s1087_s3 + $0x4] ss:$24 sps:$4 sm:$0xff]   ;;  %355 = vmatprep.mubr.bf16.mxu0 %v835_v1  ;;  %396 = vmatprep.mubr.bf16.mxu1 %v835_v1  ;;  %v749_v3 = vld [vmem:[%s1087_s3] ss:$24 sps:$4 sm:$0xff]   ;;  %v751_v5 = vld [vmem:[%s1087_s3 + $0x34] ss:$24 sps:$4 sm:$0xff]  }
   0x2   :  { %v747_v2 = vld [vmem:[%s1087_s3 + $0xc] ss:$24 sps:$4 sm:$0xff]   ;;  %323 = vmatprep.subr.bf16.mxu0 %v745_v0  ;;  %v750_v4 = vld [vmem:[%s1087_s3 + $0x8] ss:$24 sps:$4 sm:$0xff]   ;;  %v753_v6 = vld [vmem:[%s1087_s3 + $0x3c] ss:$24 sps:$4 sm:$0xff]  }
   0x3   :  { %364 = vmatprep.subr.bf16.mxu1 %v747_v2  ;;  %324 = vmatpush1.bf16.msra.mxu0 %v749_v3  ;;  %v755_v7 = vld [vmem:[%s1087_s3 + $0x30] ss:$24 sps:$4 sm:$0xff]   ;;  %v757_v9 = vld [vmem:[%s1087_s3 + $0x64] ss:$24 sps:$4 sm:$0xff]   ;;  %v761_v11 = vld [vmem:[%s1087_s3 + $0x60] ss:$24 sps:$4 sm:$0xff]  }
   0x4   :  { %365 = vmatpush1.bf16.msra.mxu1 %v750_v4  ;;  %325 = vmatprep.subr.bf16.mxu0 %v751_v5  ;;  %v756_v8 = vld [vmem:[%s1087_s3 + $0x38] ss:$24 sps:$4 sm:$0xff]   ;;  %v759_v10 = vld [vmem:[%s1087_s3 + $0x6c] ss:$24 sps:$4 sm:$0xff]   ;;  %v762_v12 = vld [vmem:[%s1087_s3 + $0x68] ss:$24 sps:$4 sm:$0xff]  }
   0x5   :  { %366 = vmatprep.subr.bf16.mxu1 %v753_v6  ;;  %v763_v13 = vld [vmem:[%s1087_s3 + $0x94] ss:$24 sps:$4 sm:$0xff]   ;;  %v767_v15 = vld [vmem:[%s1087_s3 + $0x90] ss:$24 sps:$4 sm:$0xff]   ;;  %v769_v17 = vld [vmem:[%s1087_s3 + $0xc4] ss:$24 sps:$4 sm:$0xff]  }
   0x6   :  { %v765_v14 = vld [vmem:[%s1087_s3 + $0x9c] ss:$24 sps:$4 sm:$0xff]   ;;  %v768_v16 = vld [vmem:[%s1087_s3 + $0x98] ss:$24 sps:$4 sm:$0xff]   ;;  %v771_v18 = vld [vmem:[%s1087_s3 + $0xcc] ss:$24 sps:$4 sm:$0xff]  }
   0x7   :  { %326 = vmatpush1.bf16.msra.mxu0 %v755_v7  ;;  %v773_v19 = vld [vmem:[%s1087_s3 + $0xc0] ss:$24 sps:$4 sm:$0xff]   ;;  %v775_v21 = vld [vmem:[%s1087_s3 + $0xf4] ss:$24 sps:$4 sm:$0xff]   ;;  %v779_v23 = vld [vmem:[%s1087_s3 + $0xf0] ss:$24 sps:$4 sm:$0xff]  }
   0x8   :  { %367 = vmatpush1.bf16.msra.mxu1 %v756_v8  ;;  %327 = vmatprep.subr.bf16.mxu0 %v757_v9  ;;  %v774_v20 = vld [vmem:[%s1087_s3 + $0xc8] ss:$24 sps:$4 sm:$0xff]   ;;  %v777_v22 = vld [vmem:[%s1087_s3 + $0xfc] ss:$24 sps:$4 sm:$0xff]   ;;  %v780_v24 = vld [vmem:[%s1087_s3 + $0xf8] ss:$24 sps:$4 sm:$0xff]  }
   0x9   :  { %368 = vmatprep.subr.bf16.mxu1 %v759_v10  ;;  %v781_v25 = vld [vmem:[%s1087_s3 + $0x124] ss:$24 sps:$4 sm:$0xff]   ;;  %v785_v27 = vld [vmem:[%s1087_s3 + $0x120] ss:$24 sps:$4 sm:$0xff]   ;;  %v787_v29 = vld [vmem:[%s1087_s3 + $0x154] ss:$24 sps:$4 sm:$0xff]  }
   0xa   :  { %v783_v26 = vld [vmem:[%s1087_s3 + $0x12c] ss:$24 sps:$4 sm:$0xff]   ;;  %v786_v28 = vld [vmem:[%s1087_s3 + $0x128] ss:$24 sps:$4 sm:$0xff]   ;;  %v789_v30 = vld [vmem:[%s1087_s3 + $0x15c] ss:$24 sps:$4 sm:$0xff]  }
   0xb   :  { %328 = vmatpush1.bf16.msra.mxu0 %v761_v11  ;;  %v791_v31 = vld [vmem:[%s1087_s3 + $0x150] ss:$24 sps:$4 sm:$0xff]   ;;  %v795_v33 = vld [vmem:[%s1087_s3 + $0x14] ss:$24 sps:$4 sm:$0xff]   ;;  %v798_v34 = vld [vmem:[%s1088_s2 + $0x4] ss:$24 sps:$4 sm:$0xff]  }
   0xc   :  { %369 = vmatpush1.bf16.msra.mxu1 %v762_v12  ;;  %329 = vmatprep.subr.bf16.mxu0 %v763_v13  ;;  %v792_v32 = vld [vmem:[%s1087_s3 + $0x158] ss:$24 sps:$4 sm:$0xff]   ;;  %v973_v35 = vld [vmem:[%s1089_s1] sm:$0xf]  ;;  %v801_v38 = vld [vmem:[%s1087_s3 + $0x44] ss:$24 sps:$4 sm:$0xff]  }
   0xd   :  { %370 = vmatprep.subr.bf16.mxu1 %v765_v14  ;;  %v793_v36 = vld [vmem:[%s1087_s3 + $0x10] ss:$24 sps:$4 sm:$0xff]   ;;  %v796_v37 = vld [vmem:[%s1088_s2] ss:$24 sps:$4 sm:$0xff]   ;;  %v804_v39 = vld [vmem:[%s1088_s2 + $0x34] ss:$24 sps:$4 sm:$0xff]  }
   0xe   :  { %v799_v40 = vld [vmem:[%s1087_s3 + $0x40] ss:$24 sps:$4 sm:$0xff]   ;;  %v802_v41 = vld [vmem:[%s1088_s2 + $0x30] ss:$24 sps:$4 sm:$0xff]   ;;  %v807_v42 = vld [vmem:[%s1087_s3 + $0x74] ss:$24 sps:$4 sm:$0xff]  }
   0xf   :  { %330 = vmatpush1.bf16.msra.mxu0 %v767_v15  ;;  %v810_v43 = vld [vmem:[%s1088_s2 + $0xc] ss:$24 sps:$4 sm:$0xff]   ;;  %v805_v44 = vld [vmem:[%s1087_s3 + $0x70] ss:$24 sps:$4 sm:$0xff]   ;;  %v21_v45 = vld [vmem:[%s1090_s0] sm:$0xf] }
  0x10   :  { %371 = vmatpush1.bf16.msra.mxu1 %v768_v16  ;;  %331 = vmatprep.subr.bf16.mxu0 %v769_v17  ;;  %v808_v46 = vld [vmem:[%s1088_s2 + $0x8] ss:$24 sps:$4 sm:$0xff]   ;;  %v813_v47 = vld [vmem:[%s1087_s3 + $0xa4] ss:$24 sps:$4 sm:$0xff]   ;;  %v814_v50 = vld [vmem:[%s1088_s2 + $0x38] ss:$24 sps:$4 sm:$0xff]  }
  0x11   :  { %372 = vmatprep.subr.bf16.mxu1 %v771_v18  ;;  %v816_v48 = vld [vmem:[%s1088_s2 + $0x3c] ss:$24 sps:$4 sm:$0xff]   ;;  %v811_v49 = vld [vmem:[%s1087_s3 + $0xa0] ss:$24 sps:$4 sm:$0xff]   ;;  %v817_v53 = vld [vmem:[%s1087_s3 + $0xd0] ss:$24 sps:$4 sm:$0xff]  }
  0x12   :  { %v819_v51 = vld [vmem:[%s1087_s3 + $0xd4] ss:$24 sps:$4 sm:$0xff]   ;;  %v823_v54 = vld [vmem:[%s1088_s2 + $0x10] ss:$24 sps:$4 sm:$0xff]   ;;  %v822_v55 = vld [vmem:[%s1087_s3 + $0x104] ss:$24 sps:$4 sm:$0xff]  }
  0x13   :  { %332 = vmatpush1.bf16.msra.mxu0 %v773_v19  ;;  %v825_v52 = vld [vmem:[%s1088_s2 + $0x14] ss:$24 sps:$4 sm:$0xff]   ;;  %v831_v56 = vld [vmem:[%s1088_s2 + $0x44] ss:$24 sps:$4 sm:$0xff]   ;;  %v820_v57 = vld [vmem:[%s1087_s3 + $0x100] ss:$24 sps:$4 sm:$0xff]  }
  0x14   :  { %373 = vmatpush1.bf16.msra.mxu1 %v774_v20  ;;  %333 = vmatprep.subr.bf16.mxu0 %v775_v21  ;;  %v829_v58 = vld [vmem:[%s1088_s2 + $0x40] ss:$24 sps:$4 sm:$0xff]   ;;  %v828_v59 = vld [vmem:[%s1087_s3 + $0x134] ss:$24 sps:$4 sm:$0xff]   ;;  %v826_v60 = vld [vmem:[%s1087_s3 + $0x130] ss:$24 sps:$4 sm:$0xff]  }
  0x15   :  { %374 = vmatprep.subr.bf16.mxu1 %v777_v22  ;;  %v834_v61 = vld [vmem:[%s1087_s3 + $0x164] ss:$24 sps:$4 sm:$0xff]   ;;  %v832_v62 = vld [vmem:[%s1087_s3 + $0x160] ss:$24 sps:$4 sm:$0xff]   ;;  %v636_v0 = vshrl.u32 %v635_v63, 7 }
  0x16   :  { %v633_v10 = vld [vmem:[%s1091_s4] sm:$0x3f] }
  0x17   :  { %334 = vmatpush1.bf16.msra.mxu0 %v779_v23  ;;  %v637_v9 = vsub.s32 0, %v636_v0  ;;  %v641_v11 = vsub.s32 1, %v636_v0  ;;  %v645_v21 = vsub.s32 2, %v636_v0  ;;  %v649_v23 = vsub.s32 3, %v636_v0 }
  0x18   :  { %375 = vmatpush1.bf16.msra.mxu1 %v780_v24  ;;  %335 = vmatprep.subr.bf16.mxu0 %v781_v25 }
  0x19   :  { %376 = vmatprep.subr.bf16.mxu1 %v783_v26  ;;  %v638_v12 = vrot.slane %v633_v10, %v637_v9  ;;  %v642_v14 = vrot.slane %v633_v10, %v641_v11  ;;  %v646_v24 = vrot.slane %v633_v10, %v645_v21  ;;  %v650_v26 = vrot.slane %v633_v10, %v649_v23 }
  0x1b   :  { %336 = vmatpush1.bf16.msra.mxu0 %v785_v27 }
  0x1c   :  { %377 = vmatpush1.bf16.msra.mxu1 %v786_v28  ;;  %337 = vmatprep.subr.bf16.mxu0 %v787_v29 }
  0x1d   :  { %378 = vmatprep.subr.bf16.mxu1 %v789_v30 }
  0x1f   :  { %338 = vmatpush1.bf16.msra.mxu0 %v791_v31 }
  0x20   :  { %379 = vmatpush1.bf16.msra.mxu1 %v792_v32  ;;  %405 = vmatprep.subr.bf16.mxu0 %v795_v33 }
  0x21   :  { %510 = vmatprep.subr.bf16.mxu1 %v798_v34 }
  0x22   :  { %356 = vmatmul.mubr.bf16.vlgmr.msra.gmra.mrb[0].mxu0 %v973_v35 }
  0x23   :  { %397 = vmatmul.mubr.bf16.vlgmr.msra.gmra.mrb[0].mxu1 %v973_v35  ;;  %406 = vmatpush1.bf16.msra.mxu0 %v793_v36 }
  0x24   :  { %511 = vmatpush1.bf16.msra.mxu1 %v796_v37  ;;  %407 = vmatprep.subr.bf16.mxu0 %v801_v38  ;;  %v653_v37 = vsub.s32 4, %v636_v0 }
  0x25   :  { %512 = vmatprep.subr.bf16.mxu1 %v804_v39  ;;  %542 = vmatprep.mubr.bf16.mxu1 %v835_v1  ;;  %v657_v39 = vsub.s32 5, %v636_v0 }
  0x26   :  { %437 = vmatprep.mubr.bf16.mxu0 %v835_v1 }
  0x27   :  { %408 = vmatpush1.bf16.msra.mxu0 %v799_v40  ;;  %v654_v40 = vrot.slane %v633_v10, %v653_v37 }
  0x28   :  { %513 = vmatpush1.bf16.msra.mxu1 %v802_v41  ;;  %409 = vmatprep.subr.bf16.mxu0 %v807_v42  ;;  %v658_v42 = vrot.slane %v633_v10, %v657_v39 }
  0x29   :  { %551 = vmatprep.subr.bf16.mxu1 %v810_v43 }
  0x2b   :  { %741 = vmatmul.mubr.msk.bf16.vlgmr.msra.gmra.mrb[4].mxu1 %vm506_vm0, %v21_v45  ;;  %410 = vmatpush1.bf16.msra.mxu0 %v805_v44 }
  0x2c   :  { %552 = vmatpush1.bf16.msra.mxu1 %v808_v46  ;;  %411 = vmatprep.subr.bf16.mxu0 %v813_v47 }
  0x2d   :  { %553 = vmatprep.subr.bf16.mxu1 %v816_v48  ;;  %583 = vmatprep.mubr.bf16.mxu1 %v835_v1 }
  0x2f   :  { %412 = vmatpush1.bf16.msra.mxu0 %v811_v49 }
  0x30   :  { %554 = vmatpush1.bf16.msra.mxu1 %v814_v50  ;;  %413 = vmatprep.subr.bf16.mxu0 %v819_v51 }
  0x31   :  { %592 = vmatprep.subr.bf16.mxu1 %v825_v52 }
  0x33   :  { %742 = vmatmul.mubr.msk.bf16.vlgmr.msra.gmra.mrb[8].mxu1 %vm506_vm0, %v21_v45  ;;  %414 = vmatpush1.bf16.msra.mxu0 %v817_v53 }
  0x34   :  { %593 = vmatpush1.bf16.msra.mxu1 %v823_v54  ;;  %415 = vmatprep.subr.bf16.mxu0 %v822_v55 }
  0x35   :  { %594 = vmatprep.subr.bf16.mxu1 %v831_v56  ;;  %624 = vmatprep.mubr.bf16.mxu1 %v835_v1 }
  0x37   :  { %416 = vmatpush1.bf16.msra.mxu0 %v820_v57 }
  0x38   :  { %595 = vmatpush1.bf16.msra.mxu1 %v829_v58  ;;  %417 = vmatprep.subr.bf16.mxu0 %v828_v59 }
  0x3b   :  { %743 = vmatmul.mubr.msk.bf16.vlgmr.msra.gmra.mrb[12].mxu1 %vm506_vm0, %v21_v45  ;;  %418 = vmatpush1.bf16.msra.mxu0 %v826_v60 }
  0x3c   :  { %419 = vmatprep.subr.bf16.mxu0 %v834_v61 }
  0x3f   :  { %420 = vmatpush1.bf16.msra.mxu0 %v832_v62 }
  0x42   :  { %438 = vmatmul.mubr.bf16.vlgmr.msra.gmra.mrb[4].mxu0 %v973_v35 }
  0xf5   :  { %v357_v1 = vpop.f32.mrb[0].mxu0 }
  0xf6   :  { %v398_v2 = vpop.f32.mrb[0].mxu1  ;;  %v359_v3 = vpop.f32.mrb[1].mxu0 }
  0xf7   :  { %v400_v4 = vpop.f32.mrb[1].mxu1  ;;  %v361_v5 = vpop.f32.mrb[2].mxu0 }
  0xf8   :  { %v402_v6 = vpop.f32.mrb[2].mxu1  ;;  %v362_v7 = vpop.f32.mrb[3].mxu0 }
  0xf9   :  { %v403_v8 = vpop.f32.mrb[3].mxu1 }
  0xfe   :  { %v544_v13 = vpop.f32.mrb[4].mxu1 }
  0xff   :  { %v545_v15 = vadd.f32 %v544_v13, %v357_v1  ;;  %v546_v16 = vpop.f32.mrb[5].mxu1 }
 0x100   :  { %v547_v17 = vadd.f32 %v546_v16, %v359_v3  ;;  %v548_v18 = vpop.f32.mrb[6].mxu1 }
 0x101   :  { %v665_v19 = vadd.f32 %v638_v12, %v545_v15  ;;  %v549_v20 = vpop.f32.mrb[7].mxu1 }
 0x102   :  { %v666_v22 = vadd.f32 %v642_v14, %v547_v17 }
 0x103   :  { %671 = vst [vmem:[%s1092_s5] sm:$0xff] %v665_v19 }
 0x104   :  { %672 = vst [vmem:[%s1092_s5 + $0x8] sm:$0xff] %v666_v22 }
 0x106   :  { %v585_v25 = vpop.f32.mrb[8].mxu1 }
 0x107   :  { %v586_v27 = vadd.f32 %v585_v25, %v398_v2  ;;  %v587_v28 = vpop.f32.mrb[9].mxu1 }
 0x108   :  { %v588_v29 = vadd.f32 %v587_v28, %v400_v4  ;;  %v589_v30 = vpop.f32.mrb[10].mxu1 }
 0x109   :  { %v667_v31 = vadd.f32 %v646_v24, %v586_v27  ;;  %v590_v32 = vpop.f32.mrb[11].mxu1 }
 0x10a   :  { %v668_v33 = vadd.f32 %v650_v26, %v588_v29 }
 0x10b   :  { %673 = vst [vmem:[%s1092_s5 + $0x10] sm:$0xff] %v667_v31 }
 0x10c   :  { %674 = vst [vmem:[%s1092_s5 + $0x18] sm:$0xff] %v668_v33 }
 0x10e   :  { %v626_v34 = vpop.f32.mrb[12].mxu1 }
 0x10f   :  { %v628_v35 = vpop.f32.mrb[13].mxu1 }
 0x110   :  { %v630_v36 = vpop.f32.mrb[14].mxu1 }
 0x111   :  { %v631_v38 = vpop.f32.mrb[15].mxu1 }
 0x115   :  { %v439_v41 = vpop.f32.mrb[4].mxu0 }
 0x116   :  { %v627_v43 = vadd.f32 %v626_v34, %v439_v41  ;;  %v441_v44 = vpop.f32.mrb[5].mxu0 }
 0x117   :  { %v629_v45 = vadd.f32 %v628_v35, %v441_v44  ;;  %v443_v46 = vpop.f32.mrb[6].mxu0 }
 0x118   :  { %v669_v47 = vadd.f32 %v654_v40, %v627_v43  ;;  %v444_v48 = vpop.f32.mrb[7].mxu0 }
 0x119   :  { %v670_v49 = vadd.f32 %v658_v42, %v629_v45 }
 0x11a   :  { %675 = vst [vmem:[%s1092_s5 + $0x20] sm:$0xff] %v669_v47 }
 0x11b   :  { %676 = vst [vmem:[%s1092_s5 + $0x28] sm:$0xff] %v670_v49 }

</bundles_post_ra>
